<compile_context>
chip_gen: v7x
topology: tpu7x:2x2x1
jax: 0.10.0
libtpu: 0.0.40
codegen_flags: <defaults>
</compile_context>

<pallas_src>
import functools
import math

import jax
import jax.numpy as jnp
from jax.experimental import pallas as pl
from jax.experimental.pallas import tpu as pltpu


# ------------------------------ tiling helper ------------------------------ #

def _pick(dim, target, units=(256, 128, 8)):
    """Largest tile <= target that divides dim, preferring larger alignment
    units; falls back to the full dim for small / awkward sizes."""
    if dim <= target:
        return dim
    for unit in units:
        t = (target // unit) * unit
        while t >= unit:
            if t <= dim and dim % t == 0:
                return t
            t -= unit
    return dim


def _gelu(y):
    # TODO(synk): HF BERT uses exact erf-GELU; tanh approximation kept here for
    # robust Mosaic lowering (EUP tanh).
    return 0.5 * y * (1.0 + jnp.tanh(0.7978845608028654 * (y + 0.044715 * y * y * y)))


# ----------------------------- Pallas kernels ------------------------------ #

def _dense_kernel(x_ref, w_ref, b_ref, o_ref, *, act):
    """o = act(x @ w + b); full-K single shot, bf16 inputs, fp32 accumulate."""
    y = jnp.dot(x_ref[...], w_ref[...], preferred_element_type=jnp.float32)
    y = y + b_ref[...]
    if act == "gelu":
        y = _gelu(y)
    elif act == "tanh":
        y = jnp.tanh(y)
    o_ref[...] = y.astype(o_ref.dtype)


def dense(x, w, b, act="none", out_dtype=jnp.float32, tm_t=256, tn_t=512):
    # TODO(synk): on v7x, fp8 weights (per-channel scaled) would halve weight
    # DMA bytes and roughly double MXU throughput on the FFN matmuls.
    M, K = x.shape
    _, N = w.shape
    tm = _pick(M, tm_t, (16, 8))          # bf16 packs 16 rows / sublane group
    tn = _pick(N, tn_t, (256, 128))       # 256-aligned for the 2x256^2 MXU
    return pl.pallas_call(
        functools.partial(_dense_kernel, act=act),
        out_shape=jax.ShapeDtypeStruct((M, N), out_dtype),
        grid=(M // tm, N // tn),
        in_specs=[
            pl.BlockSpec((tm, K), lambda i, j: (i, 0)),
            pl.BlockSpec((K, tn), lambda i, j: (0, j)),
            pl.BlockSpec((1, tn), lambda i, j: (0, j)),
        ],
        out_specs=pl.BlockSpec((tm, tn), lambda i, j: (i, j)),
        compiler_params=pltpu.CompilerParams(
            dimension_semantics=("parallel", "parallel")),
    )(x, w, b.reshape(1, N))


def _dense_res_ln_kernel(x_ref, w_ref, b_ref, r_ref, g_ref, be_ref,
                         o32_ref, o16_ref, *, eps):
    """LayerNorm(x @ w + b + residual); emits fp32 (residual path) + bf16
    (next matmul input).  Full-K, full-N per row tile."""
    y = jnp.dot(x_ref[...], w_ref[...], preferred_element_type=jnp.float32)
    y = y + b_ref[...] + r_ref[...]
    mean = jnp.mean(y, axis=-1, keepdims=True)
    var = jnp.mean((y - mean) * (y - mean), axis=-1, keepdims=True)
    y = (y - mean) * jax.lax.rsqrt(var + eps)
    y = y * g_ref[...] + be_ref[...]
    o32_ref[...] = y
    o16_ref[...] = y.astype(jnp.bfloat16)


def dense_residual_ln(x, w, b, res, gamma, beta, eps=1e-12, tm_t=256):
    M, K = x.shape
    _, N = w.shape
    tm = _pick(M, tm_t, (16, 8))
    return pl.pallas_call(
        functools.partial(_dense_res_ln_kernel, eps=eps),
        out_shape=(jax.ShapeDtypeStruct((M, N), jnp.float32),
                   jax.ShapeDtypeStruct((M, N), jnp.bfloat16)),
        grid=(M // tm,),
        in_specs=[
            pl.BlockSpec((tm, K), lambda i: (i, 0)),
            pl.BlockSpec((K, N), lambda i: (0, 0)),
            pl.BlockSpec((1, N), lambda i: (0, 0)),
            pl.BlockSpec((tm, N), lambda i: (i, 0)),
            pl.BlockSpec((1, N), lambda i: (0, 0)),
            pl.BlockSpec((1, N), lambda i: (0, 0)),
        ],
        out_specs=(pl.BlockSpec((tm, N), lambda i: (i, 0)),
                   pl.BlockSpec((tm, N), lambda i: (i, 0))),
        compiler_params=pltpu.CompilerParams(dimension_semantics=("parallel",)),
    )(x, w, b.reshape(1, N), res, gamma.reshape(1, N), beta.reshape(1, N))


def _embed_ln_kernel(we_ref, pe_ref, te_ref, g_ref, b_ref, o32_ref, o16_ref, *, eps):
    """word_emb + pos_emb + type_emb fused into the LayerNorm prologue."""
    y = we_ref[0] + pe_ref[...] + te_ref[...]
    mean = jnp.mean(y, axis=-1, keepdims=True)
    var = jnp.mean((y - mean) * (y - mean), axis=-1, keepdims=True)
    y = (y - mean) * jax.lax.rsqrt(var + eps)
    y = y * g_ref[...] + b_ref[...]
    o32_ref[0] = y
    o16_ref[0] = y.astype(jnp.bfloat16)


def embed_ln(wemb, pos, typ, gamma, beta, eps=1e-12):
    B, S, H = wemb.shape
    return pl.pallas_call(
        functools.partial(_embed_ln_kernel, eps=eps),
        out_shape=(jax.ShapeDtypeStruct((B, S, H), jnp.float32),
                   jax.ShapeDtypeStruct((B, S, H), jnp.bfloat16)),
        grid=(B,),
        in_specs=[
            pl.BlockSpec((1, S, H), lambda b: (b, 0, 0)),
            pl.BlockSpec((S, H), lambda b: (0, 0)),
            pl.BlockSpec((1, H), lambda b: (0, 0)),
            pl.BlockSpec((1, H), lambda b: (0, 0)),
            pl.BlockSpec((1, H), lambda b: (0, 0)),
        ],
        out_specs=(pl.BlockSpec((1, S, H), lambda b: (b, 0, 0)),
                   pl.BlockSpec((1, S, H), lambda b: (b, 0, 0))),
        compiler_params=pltpu.CompilerParams(dimension_semantics=("parallel",)),
    )(wemb, pos, typ.reshape(1, H), gamma.reshape(1, H), beta.reshape(1, H))


def _attention_kernel(q_ref, k_ref, v_ref, m_ref, o_ref, *, hb, d, scale):
    """One (batch, head-group) tile: per-head softmax(QK^T)V, lane-dense store."""
    mask = m_ref[0]                        # (1, S) fp32 additive mask
    ctxs = []
    for g in range(hb):                    # hb in {1, 2}; static, tiny unroll
        q = q_ref[0, :, g * d:(g + 1) * d]
        k = k_ref[0, :, g * d:(g + 1) * d]
        v = v_ref[0, :, g * d:(g + 1) * d]
        s = jax.lax.dot_general(q, k, (((1,), (1,)), ((), ())),
                                preferred_element_type=jnp.float32)
        s = s * scale + mask               # (S, S)
        s = s - jnp.max(s, axis=-1, keepdims=True)
        p = jnp.exp(s)
        inv = pl.reciprocal(jnp.sum(p, axis=-1, keepdims=True), approx=True)
        ctx = jnp.dot(p.astype(v.dtype), v,
                      preferred_element_type=jnp.float32) * inv
        ctxs.append(ctx.astype(o_ref.dtype))
    o_ref[0] = ctxs[0] if hb == 1 else jnp.concatenate(ctxs, axis=-1)


def attention(qkv, ext_mask, nh, d, scale):
    """Packed (B, S, 3H) QKV -> (B, S, H) context, grid over (batch, head-group).

    Per-head q/k/v blocks are lane-dense slices of the packed lane dim, so there
    are no HBM head transposes and the output store is an unmasked >=128-lane vst.
    """
    B, S, threeH = qkv.shape
    H = nh * d
    if d % 128 == 0:
        hb = 1                              # one head per grid step (demo: d=128)
    elif 128 % d == 0 and nh % (128 // d) == 0:
        hb = 128 // d                       # e.g. real BERT-base d=64 -> 2 heads/tile
    else:
        hb = nh
    ng = nh // hb
    blk = hb * d
    # TODO(synk): for S >= 512, tile queries flash-style (m/l/acc scratch) instead
    # of materializing the full (S, S) fp32 score matrix per head.
    return pl.pallas_call(
        functools.partial(_attention_kernel, hb=hb, d=d, scale=scale),
        out_shape=jax.ShapeDtypeStruct((B, S, H), jnp.bfloat16),
        grid=(B, ng),
        in_specs=[
            pl.BlockSpec((1, S, blk), lambda b, g: (b, 0, g)),            # Q slab
            pl.BlockSpec((1, S, blk), lambda b, g: (b, 0, ng + g)),       # K slab
            pl.BlockSpec((1, S, blk), lambda b, g: (b, 0, 2 * ng + g)),   # V slab
            pl.BlockSpec((1, 1, S), lambda b, g: (b, 0, 0)),              # mask
        ],
        out_specs=pl.BlockSpec((1, S, blk), lambda b, g: (b, 0, g)),
        compiler_params=pltpu.CompilerParams(
            dimension_semantics=("parallel", "parallel")),
    )(qkv, qkv, qkv, ext_mask)


# --------------------------- parameter construction ------------------------ #

def init_params(cfg, key):
    H, I, V, P = cfg["hidden"], cfg["intermediate"], cfg["vocab"], cfg["max_pos"]
    keys = iter(jax.random.split(key, 8 + 12 * cfg["layers"]))

    def w(shape, dtype=jnp.bfloat16):
        return (jax.random.normal(next(keys), shape, jnp.float32) * 0.02).astype(dtype)

    params = {
        "word_emb": w((V, H), jnp.float32),
        "pos_emb": w((P, H), jnp.float32),
        "type_emb": w((2, H), jnp.float32),
        "emb_ln_g": jnp.ones((H,), jnp.float32),
        "emb_ln_b": jnp.zeros((H,), jnp.float32),
        "pool_w": w((H, H)),
        "pool_b": jnp.zeros((H,), jnp.float32),
        "layers": [],
    }
    for _ in range(cfg["layers"]):
        params["layers"].append({
            # fused QKV projection weight (H, 3H) in bf16
            "wqkv": w((H, 3 * H)), "bqkv": jnp.zeros((3 * H,), jnp.float32),
            "wo": w((H, H)), "bo": jnp.zeros((H,), jnp.float32),
            "ln1_g": jnp.ones((H,), jnp.float32), "ln1_b": jnp.zeros((H,), jnp.float32),
            "w1": w((H, I)), "b1": jnp.zeros((I,), jnp.float32),
            "w2": w((I, H)), "b2": jnp.zeros((H,), jnp.float32),
            "ln2_g": jnp.ones((H,), jnp.float32), "ln2_b": jnp.zeros((H,), jnp.float32),
        })
    return params


# ------------------------------ forward pass ------------------------------- #

def bert_forward(params, input_ids, attention_mask, cfg):
    B, S = input_ids.shape
    H, NH = cfg["hidden"], cfg["heads"]
    D = H // NH
    M = B * S
    scale = 1.0 / math.sqrt(D)

    # Embedding gather stays in plain JAX glue; add + LayerNorm fused in Pallas.
    wemb = params["word_emb"][input_ids]                 # (B, S, H) fp32
    pos = params["pos_emb"][:S]                          # (S, H) fp32
    typ = params["type_emb"][0]                          # (H,)   fp32  (token_type_ids = 0)
    x32, x16 = embed_ln(wemb, pos, typ, params["emb_ln_g"], params["emb_ln_b"])
    x32 = x32.reshape(M, H)                              # fp32 residual path
    x16 = x16.reshape(M, H)                              # bf16 matmul-input path

    # HF-style extended additive attention mask, (B, 1, S).
    ext_mask = ((1.0 - attention_mask.astype(jnp.float32)) * -10000.0
                ).reshape(B, 1, S)

    for lyr in params["layers"]:
        # Fused QKV projection: one (H, 3H) matmul, bf16 in / bf16 out.
        qkv = dense(x16, lyr["wqkv"], lyr["bqkv"], out_dtype=jnp.bfloat16)  # (M, 3H)
        ctx = attention(qkv.reshape(B, S, 3 * H), ext_mask, NH, D, scale)   # (B,S,H)

        # Attention output projection fused with residual add + LayerNorm.
        x32, x16 = dense_residual_ln(ctx.reshape(M, H), lyr["wo"], lyr["bo"],
                                     x32, lyr["ln1_g"], lyr["ln1_b"])

        # FFN: GELU matmul, then second matmul fused with residual + LayerNorm.
        h = dense(x16, lyr["w1"], lyr["b1"], act="gelu", out_dtype=jnp.bfloat16)
        x32, x16 = dense_residual_ln(h, lyr["w2"], lyr["b2"],
                                     x32, lyr["ln2_g"], lyr["ln2_b"])

    # Pooler = outputs[1]: tanh(Linear(last_hidden_state[:, 0, :]))
    cls = x16.reshape(B, S, H)[:, 0, :]                                     # (B, H)
    pooled = dense(cls, params["pool_w"], params["pool_b"],
                   act="tanh", out_dtype=jnp.float32)
    return pooled                                                           # (B, H)


# ---------------------------------- main ----------------------------------- #

if __name__ == "__main__":
    # Small but TPU-tile-friendly config: head_dim = 256/2 = 128 (lane aligned).
    cfg = dict(vocab=128, hidden=256, heads=2, layers=2,
               intermediate=1024, max_pos=32)
    B, S = 2, 8

    key = jax.random.PRNGKey(0)
    k_param, k_ids = jax.random.split(key)
    params = init_params(cfg, k_param)

    input_ids = jax.random.randint(k_ids, (B, S), 0, cfg["vocab"], dtype=jnp.int32)
    attention_mask = jnp.ones((B, S), dtype=jnp.int32).at[1, 6:].set(0)  # pad tail of row 1

    out = bert_forward(params, input_ids, attention_mask, cfg)
    out = jax.block_until_ready(out)
    assert out.shape == (B, cfg["hidden"]) and out.dtype == jnp.float32
    assert bool(jnp.all(jnp.isfinite(out)))
    print("KERNEL_OK")
</pallas_src>

<mosaic_0001>
module attributes {stable_mosaic.version = 11 : i64} {
  func.func @_embed_ln_kernel(%arg0: i32, %arg1: memref<1x8x256xf32, #tpu.memory_space<vmem>>, %arg2: memref<8x256xf32, #tpu.memory_space<vmem>>, %arg3: memref<1x256xf32, #tpu.memory_space<vmem>>, %arg4: memref<1x256xf32, #tpu.memory_space<vmem>>, %arg5: memref<1x256xf32, #tpu.memory_space<vmem>>, %arg6: memref<1x8x256xf32, #tpu.memory_space<vmem>>, %arg7: memref<1x8x256xbf16, #tpu.memory_space<vmem>>) attributes {dimension_semantics = [#tpu.dimension_semantics<parallel>], iteration_bounds = array<i64: 2>, scalar_prefetch = 0 : i64, scratch_operands = 0 : i64, tpu.core_type = #tpu.core_type<tc>, window_params = [{transform_indices = @transform_0, window_bounds = array<i64: 1, 8, 256>}, {pipeline_mode = #tpu.pipeline_mode<synchronous>, transform_indices = @transform_1, window_bounds = array<i64: 8, 256>}, {pipeline_mode = #tpu.pipeline_mode<synchronous>, transform_indices = @transform_2, window_bounds = array<i64: 1, 256>}, {pipeline_mode = #tpu.pipeline_mode<synchronous>, transform_indices = @transform_3, window_bounds = array<i64: 1, 256>}, {pipeline_mode = #tpu.pipeline_mode<synchronous>, transform_indices = @transform_4, window_bounds = array<i64: 1, 256>}, {transform_indices = @transform_5, window_bounds = array<i64: 1, 8, 256>}, {transform_indices = @transform_6, window_bounds = array<i64: 1, 8, 256>}]} {
    %c0 = arith.constant 0 : index
    %c0_0 = arith.constant 0 : index
    %c0_1 = arith.constant 0 : index
    %0 = vector.load %arg1[%c0, %c0_0, %c0_1] : memref<1x8x256xf32, #tpu.memory_space<vmem>>, vector<1x8x256xf32>
    %1 = vector.shape_cast %0 : vector<1x8x256xf32> to vector<8x256xf32>
    %c0_2 = arith.constant 0 : index
    %c0_3 = arith.constant 0 : index
    %2 = vector.load %arg2[%c0_2, %c0_3] : memref<8x256xf32, #tpu.memory_space<vmem>>, vector<8x256xf32>
    %3 = arith.addf %1, %2 : vector<8x256xf32>
    %c0_4 = arith.constant 0 : index
    %c0_5 = arith.constant 0 : index
    %4 = vector.load %arg3[%c0_4, %c0_5] : memref<1x256xf32, #tpu.memory_space<vmem>>, vector<1x256xf32>
    %5 = vector.broadcast %4 : vector<1x256xf32> to vector<8x256xf32>
    %6 = arith.addf %3, %5 : vector<8x256xf32>
    %cst = arith.constant dense<0.000000e+00> : vector<8xf32>
    %7 = vector.multi_reduction <add>, %6, %cst [1] : vector<8x256xf32> to vector<8xf32>
    %8 = vector.shape_cast %7 : vector<8xf32> to vector<8x1xf32>
    %cst_6 = arith.constant 2.560000e+02 : f32
    %9 = vector.broadcast %cst_6 : f32 to vector<8x1xf32>
    %10 = arith.divf %8, %9 : vector<8x1xf32>
    %11 = vector.broadcast %10 : vector<8x1xf32> to vector<8x256xf32>
    %12 = arith.subf %6, %11 : vector<8x256xf32>
    %13 = vector.broadcast %10 : vector<8x1xf32> to vector<8x256xf32>
    %14 = arith.subf %6, %13 : vector<8x256xf32>
    %15 = arith.mulf %12, %14 : vector<8x256xf32>
    %cst_7 = arith.constant dense<0.000000e+00> : vector<8xf32>
    %16 = vector.multi_reduction <add>, %15, %cst_7 [1] : vector<8x256xf32> to vector<8xf32>
    %17 = vector.shape_cast %16 : vector<8xf32> to vector<8x1xf32>
    %cst_8 = arith.constant 2.560000e+02 : f32
    %18 = vector.broadcast %cst_8 : f32 to vector<8x1xf32>
    %19 = arith.divf %17, %18 : vector<8x1xf32>
    %20 = vector.broadcast %10 : vector<8x1xf32> to vector<8x256xf32>
    %21 = arith.subf %6, %20 : vector<8x256xf32>
    %cst_9 = arith.constant 9.99999996E-13 : f32
    %22 = vector.broadcast %cst_9 : f32 to vector<8x1xf32>
    %23 = arith.addf %19, %22 : vector<8x1xf32>
    %24 = math.rsqrt %23 : vector<8x1xf32>
    %25 = vector.broadcast %24 : vector<8x1xf32> to vector<8x256xf32>
    %26 = arith.mulf %21, %25 : vector<8x256xf32>
    %c0_10 = arith.constant 0 : index
    %c0_11 = arith.constant 0 : index
    %27 = vector.load %arg4[%c0_10, %c0_11] : memref<1x256xf32, #tpu.memory_space<vmem>>, vector<1x256xf32>
    %28 = vector.broadcast %27 : vector<1x256xf32> to vector<8x256xf32>
    %29 = arith.mulf %26, %28 : vector<8x256xf32>
    %c0_12 = arith.constant 0 : index
    %c0_13 = arith.constant 0 : index
    %30 = vector.load %arg5[%c0_12, %c0_13] : memref<1x256xf32, #tpu.memory_space<vmem>>, vector<1x256xf32>
    %31 = vector.broadcast %30 : vector<1x256xf32> to vector<8x256xf32>
    %32 = arith.addf %29, %31 : vector<8x256xf32>
    %c0_14 = arith.constant 0 : index
    %c0_15 = arith.constant 0 : index
    %c0_16 = arith.constant 0 : index
    %33 = vector.load %arg6[%c0_14, %c0_15, %c0_16] : memref<1x8x256xf32, #tpu.memory_space<vmem>>, vector<1x8x256xf32>
    %34 = vector.shape_cast %33 : vector<1x8x256xf32> to vector<8x256xf32>
    %35 = vector.shape_cast %32 : vector<8x256xf32> to vector<1x8x256xf32>
    tpu.vector_store %arg6[%c0_14, %c0_15, %c0_16], %35 {strides = array<i32>} : memref<1x8x256xf32, #tpu.memory_space<vmem>>, vector<1x8x256xf32>,
    %36 = arith.truncf %32 : vector<8x256xf32> to vector<8x256xbf16>
    %c0_17 = arith.constant 0 : index
    %c0_18 = arith.constant 0 : index
    %c0_19 = arith.constant 0 : index
    %37 = vector.load %arg7[%c0_17, %c0_18, %c0_19] : memref<1x8x256xbf16, #tpu.memory_space<vmem>>, vector<1x8x256xbf16>
    %38 = vector.shape_cast %37 : vector<1x8x256xbf16> to vector<8x256xbf16>
    %39 = vector.shape_cast %36 : vector<8x256xbf16> to vector<1x8x256xbf16>
    tpu.vector_store %arg7[%c0_17, %c0_18, %c0_19], %39 {strides = array<i32>} : memref<1x8x256xbf16, #tpu.memory_space<vmem>>, vector<1x8x256xbf16>,
    return
  }
  func.func @transform_0(%arg0: i32) -> (i32, i32, i32) {
    %c0_i32 = arith.constant 0 : i32
    %c0_i32_0 = arith.constant 0 : i32
    %c0_i32_1 = arith.constant 0 : i32
    return %arg0, %c0_i32, %c0_i32_0 : i32, i32, i32
  }
  func.func @transform_1(%arg0: i32) -> (i32, i32) {
    %c0_i32 = arith.constant 0 : i32
    %c0_i32_0 = arith.constant 0 : i32
    %c0_i32_1 = arith.constant 0 : i32
    return %c0_i32, %c0_i32_0 : i32, i32
  }
  func.func @transform_2(%arg0: i32) -> (i32, i32) {
    %c0_i32 = arith.constant 0 : i32
    %c0_i32_0 = arith.constant 0 : i32
    %c0_i32_1 = arith.constant 0 : i32
    return %c0_i32, %c0_i32_0 : i32, i32
  }
  func.func @transform_3(%arg0: i32) -> (i32, i32) {
    %c0_i32 = arith.constant 0 : i32
    %c0_i32_0 = arith.constant 0 : i32
    %c0_i32_1 = arith.constant 0 : i32
    return %c0_i32, %c0_i32_0 : i32, i32
  }
  func.func @transform_4(%arg0: i32) -> (i32, i32) {
    %c0_i32 = arith.constant 0 : i32
    %c0_i32_0 = arith.constant 0 : i32
    %c0_i32_1 = arith.constant 0 : i32
    return %c0_i32, %c0_i32_0 : i32, i32
  }
  func.func @transform_5(%arg0: i32) -> (i32, i32, i32) {
    %c0_i32 = arith.constant 0 : i32
    %c0_i32_0 = arith.constant 0 : i32
    %c0_i32_1 = arith.constant 0 : i32
    return %arg0, %c0_i32, %c0_i32_0 : i32, i32, i32
  }
  func.func @transform_6(%arg0: i32) -> (i32, i32, i32) {
    %c0_i32 = arith.constant 0 : i32
    %c0_i32_0 = arith.constant 0 : i32
    %c0_i32_1 = arith.constant 0 : i32
    return %arg0, %c0_i32, %c0_i32_0 : i32, i32, i32
  }
}

</mosaic_0001>

<bundles_post_ra>
// kernel: tpu_custom_call.1
= control target key start
LH: loop header
LB: loop body
LE: loop exit
PB: predicated region body
PF: predicated region fallthrough
CT: control target
= control target key end

     0   :  { %12 = vsyncpa [#allocation3], 0  ;;  %s1053_s0 = inlined_call_operand.hbm [shape: f32[2,8,256], index: 0, kind: input, shape index: {}]   ;;  %s1054_s1 = inlined_call_operand.hbm [shape: f32[8,256], index: 1, kind: input, shape index: {}]   ;;  %s1055_s2 = inlined_call_operand.vmem [shape: f32[1,256], index: 2, kind: input, shape index: {}]   ;;  %s1056_s3 = inlined_call_operand.vmem [shape: f32[1,256], index: 3, kind: input, shape index: {}]   ;;  %s1057_s4 = inlined_call_operand.vmem [shape: f32[1,256], index: 4, kind: input, shape index: {}]   ;;  %s1058_s5 = inlined_call_operand.hbm [shape: f32[2,8,256], index: 5, kind: output, shape index: {0}]   ;;  %s1059_s6 = inlined_call_operand.hbm [shape: bf16[2,8,256], index: 6, kind: output, shape index: {1}]  }
   0x1   :  { %14 = vsyncpa [#allocation3 + $0x1], 0 }
   0x2   :  { %15 = vsyncpa [#allocation6], 0 }
   0x3   :  { %16 = vsyncpa [#allocation4], 0 }
   0x4   :  { %18 = vsyncpa [#allocation4 + $0x1], 0 }
   0x5   :  { %19 = vsyncpa [#allocation9], 0 }
   0x6   :  { %21 = vsyncpa [#allocation9 + $0x1], 0  ;;  %s804_s21 = smov 0   ;;  %s806_s22 = smov 0  }
   0x7   :  { %s808_s23 = smov 0   ;;  %s810_s24 = smov 0  }
   0x8 LB: > { %s825_s25 = sadd.s32 4294967295, %s763_s24   ;;  %s514_s26 = sadd.s32 4294967294, %s763_s24   ;;  %s763_s24 = sphi %s810_s24, %s1083_s24   ;;  %s759_s23 = sphi %s808_s23, %s1082_s23   ;;  %s755_s22 = sphi %s806_s22, %s1081_s22   ;;  %s751_s21 = sphi %s804_s21, %s1080_s21  }
   0x9   : > { %p47_p0 = scmp.ne.s32.totalorder %s755_s22, %s751_s21  ;;  %p1060_p1 = scmp.eq.s32.totalorder %s825_s25, 0 }
   0xa   : > { %p161_p3 = scmp.eq.s32.totalorder %s514_s26, 1  ;;  %p515_p5 = scmp.ge.s32.totalorder %s763_s24, 1 }
   0xb   : > { %p834_p4 = por %p1060_p1, %p47_p0  ;;  %p194_p7 = scmp.lt.s32.totalorder %s763_s24, 3 }
   0xc   : > { %p839_p6 = por %p161_p3, %p47_p0  ;;  %s765_s30 = smov [#allocation5]  }
   0xd   : > { %s1063_s27 = scalar_select %p834_p4, 1, 0 }
   0xe   : > { %s1064_s28 = scalar_select %p839_p6, 1, 0 }
   0xf   : > { %p844_p8 = pnand %p515_p5, %p194_p7  ;;  %s207_s7 = sshll.u32 %s765_s30, 4  ;;  %s208_s7 = int_to_ptr.vmem [resolvable:$true] %s207_s7 }
  0x10   : > { %s852_s8 = sadd.s32 1, %s763_s24   ;;  %s34_s12 = sadd.s32 1, %s759_s23 }
  0x11   : > { %s1065_s29 = scalar_select %p844_p8, 1, 0 }
  0x12   : > { %p549_p10 = pneg %p844_p8  ;;  %s31_s10 = ssub.s32 %s763_s24, %s852_s8 }
  0x13   : > { %p862_p12 = scmp.eq.s32.totalorder %s31_s10, 0  ;;  %s603_s15 = scalar_lea.hbm %s1054_s1, 256 }
  0x14   : > { %p856_p11 = pnand %p549_p10, %p1060_p1  ;;  %p604_p0 = scmp.ne.s32.totalorder %s1054_s1, %s603_s15 }
  0x15   : > { %s1067_s11 = scalar_select %p862_p12, 1, 0 }
  0x16   : > { %p605_p3 = pneg %p856_p11  ;;  %p610_p10 = scmp.lt.u32.totalorder %s603_s15, %s1054_s1 }
  0x18   : > { %p606_p5 = pnand %p605_p3, %p604_p0 }
  0x1a   : > { %p607_p7 = pneg %p606_p5 }
  0x1c   : > { %p612_p9 = pnand %p610_p10, %p607_p7 }
  0x1e   : > { %615 = shalt.err (!%p612_p9)
}
  0x1f   : > { %s616_s20 = scalar_lea.vmem %s208_s7, 256  ;;  %p624_p6 = scmp.lt.s32.totalorder %s208_s7, %s208_s7 }
  0x20   : > { %p617_p1 = scmp.ne.s32.totalorder %s208_s7, %s616_s20  ;;  %p625_p4 = scmp.lt.s32.totalorder %s616_s20, %s616_s20 }
  0x22   : > { %p619_p2 = pnand %p617_p1, %p605_p3  ;;  %p626_p8 = por %p625_p4, %p624_p6 }
  0x24   : > { %p620_p13 = pneg %p619_p2 }
  0x26   : > { %p627_p12 = pnand %p626_p8, %p620_p13 }
  0x28   : > { %630 = shalt.err (!%p627_p12)
}
  0x29   : > { %552 = dma.hbm_to_vmem [thread:$0]  (!%p856_p11), %s1054_s1, 256, %s208_s7, [#allocation6]  }
  0x2a   : > { %p1068_p1 = scmp.ne.s32.totalorder %s1067_s11, 0  ;;  %p42_p2 = scmp.eq.s32.totalorder %s763_s24, 0 }
  0x2b   : > { %p1069_p4 = scmp.ne.s32.totalorder %s759_s23, %s755_s22  ;;  %p1070_p6 = scmp.eq.s32.totalorder %s825_s25, 1 }
  0x2c   : > { %s888_s10 = scalar_select %p1068_p1, %s759_s23, %s34_s12  }
  0x2d   : > { %p896_p8 = por %p1070_p6, %p1069_p4  ;;  %p565_p9 = scmp.lt.s32.totalorder %s763_s24, 2 }
  0x2e   : > { %s227_s13 = sand.u32 1, %s759_s23   ;;  %p1072_p12 = pmov %p1069_p4 }
  0x2f   : > { %s518_s14 = sshll.u32 %s227_s13, 4  ;;  %s535_s15 = sshll.u32 %s763_s24, 8 }
  0x30   : > { %p43_p13 = por %p42_p2, %p1072_p12  ;;  %s909_s7 = scalar_lea.hbm %s1053_s0, %s535_s15 }
  0x31   : > { %s231_s11 = scalar_lea.vmem [#allocation2], %s518_s14  ;;  %s228_s19 = scalar_lea.sflag [#allocation3], %s227_s13 }
  0x32   : > { %s239_s12 = sshll.u32 %s231_s11, 4  ;;  %p911_p11 = pnand %p565_p9, %p43_p13  ;;  %s915_s12 = int_to_ptr.vmem [resolvable:$true] %s239_s12 }
  0x33   : > { %s631_s20 = scalar_lea.hbm %s909_s7, 256  ;;  %s636_s14 = scalar_lea.hbm %s1053_s0, 512 }
  0x34   : > { %p632_p0 = scmp.ne.s32.totalorder %s909_s7, %s631_s20  ;;  %p633_p3 = pneg %p911_p11 }
  0x35   : > { %p637_p10 = scmp.lt.u32.totalorder %s909_s7, %s1053_s0  ;;  %p638_p1 = scmp.lt.u32.totalorder %s636_s14, %s631_s20 }
  0x36   : > { %p634_p5 = pnand %p633_p3, %p632_p0  ;;  %p640_p4 = scmp.lt.u32.totalorder %s631_s20, %s909_s7 }
  0x37   : > { %p639_p2 = por %p638_p1, %p637_p10 }
  0x38   : > { %p635_p7 = pneg %p634_p5 }
  0x39   : > { %p641_p6 = por %p640_p4, %p639_p2 }
  0x3b   : > { %p642_p9 = pnand %p641_p6, %p635_p7 }
  0x3d   : > { %645 = shalt.err (!%p642_p9)
}
  0x3e   : > { %s646_s13 = scalar_lea.vmem %s915_s12, 256  ;;  %s766_s17 = smov [#allocation2]  }
  0x3f   : > { %p647_p12 = scmp.ne.s32.totalorder %s915_s12, %s646_s13  ;;  %s651_s11 = sshll.u32 %s766_s17, 4  ;;  %s652_s11 = int_to_ptr.vmem [resolvable:$false] %s651_s11 }
  0x40   : > { %s653_s26 = scalar_lea.vmem %s652_s11, 512  ;;  %p654_p5 = scmp.lt.s32.totalorder %s915_s12, %s652_s11 }
  0x41   : > { %p649_p13 = pnand %p647_p12, %p633_p3  ;;  %p655_p10 = scmp.lt.s32.totalorder %s653_s26, %s646_s13 }
  0x43   : > { %p650_p0 = pneg %p649_p13  ;;  %p656_p1 = por %p655_p10, %p654_p5 }
  0x45   : > { %p657_p2 = pnand %p656_p1, %p650_p0 }
  0x47   : > { %660 = shalt.err (!%p657_p2)
}
  0x48   : > { %556 = dma.hbm_to_vmem [thread:$0]  (!%p911_p11), %s909_s7, 256, %s915_s12, %s228_s19  }
  0x49   : > { %p1074_p7 = scmp.ne.s32.totalorder %s1065_s29, 0 }
  0x4a   : > { %s945_s20 = sand.u32 (!%p1074_p7), 1, %s755_s22   ;;  %p1075_p3 = scmp.ne.s32.totalorder (!%p1074_p7), %s1063_s27, 0 }
  0x4b   : > { %248 = sbr.rel (%p1074_p7) target bundleno = 448 (0x1c0), region = 40  ;;  %s522_s30 = sshll.u32 (!%p1074_p7), %s945_s20, 4 }
  0x4c   : > { %s251_s14 = scalar_lea.sflag (!%p1074_p7), [#allocation3], %s945_s20  ;;  %s254_s15 = scalar_lea.vmem (!%p1074_p7), [#allocation2], %s522_s30 }
  0x52   : > { %734 = dma.done.wait (%p1075_p3), %s251_s14, 256  }
  0x53   : > { %736 = vsyncadd (%p1075_p3), %s251_s14, 4294967040  ;;  %p1076_p11 = scmp.eq.s32.totalorder %s825_s25, 0 }
  0x55   : > { %738 = dma.done.wait (%p1076_p11), [#allocation6], 256   ;;  %p1077_p4 = pmov %p1076_p11 }
  0x56   : > { %v300_v0 = vlaneseq  ;;  %v292_v4 = vld [vmem:[%s254_s15] sm:$0xff]  ;;  %v293_v5 = vld [vmem:[%s254_s15 + $0x8] sm:$0xff]  ;;  %s525_s16 = sshll.u32 %s945_s20, 3  ;;  %s537_s13 = sshll.u32 %s825_s25, 8 }
  0x57   : > { %740 = vsyncadd (%p1077_p4), [#allocation6], 4294967040  ;;  %v294_v6 = vld [vmem:[#allocation5] sm:$0xff]  ;;  %v295_v7 = vld [vmem:[#allocation5 + $0x8] sm:$0xff]  ;;  %s284_s17 = scalar_lea.vmem [#allocation7], %s522_s30  ;;  %s538_s26 = sshll.u32 %s825_s25, 7 }
  0x58   : > { %v301_v1 = vshrl.u32 %v300_v0, 7  ;;  %v296_v8 = vadd.f32 %v294_v6, %v292_v4  ;;  %v298_v9 = vld [vmem:[%s1055_s2] sm:$0x3]  ;;  %v297_v10 = vadd.f32 %v295_v7, %v293_v5  ;;  %s388_s11 = sshll.u32 %s284_s17, 4  ;;  %s973_s14 = scalar_lea.vmem [#allocation8], %s525_s16  ;;  %s981_s11 = int_to_ptr.vmem [resolvable:$true] %s388_s11 }
  0x59   : > { %v329_v26 = vld [vmem:[%s1056_s3] sm:$0x3]  ;;  %s402_s15 = sshll.u32 %s973_s14, 4  ;;  %s979_s27 = scalar_lea.hbm %s1058_s5, %s537_s13  ;;  %s988_s15 = int_to_ptr.vmem [resolvable:$true] %s402_s15 }
  0x5a   : > { %v302_v2 = vsub.s32 0, %v301_v1  ;;  %v306_v3 = vsub.s32 1, %v301_v1  ;;  %v343_v27 = vld [vmem:[%s1057_s4] sm:$0x3]  ;;  %s986_s12 = scalar_lea.hbm %s1059_s6, %s538_s26  ;;  %s369_s18 = scalar_lea.sflag [#allocation4], %s945_s20 }
  0x5b   : > { %s661_s19 = scalar_lea.vmem %s981_s11, 256  ;;  %s767_s16 = smov [#allocation7]  }
  0x5c   : > { %v303_v11 = vrot.slane %v298_v9, %v302_v2  ;;  %v307_v12 = vrot.slane %v298_v9, %v306_v3  ;;  %v334_v28 = vrot.slane %v329_v26, %v302_v2  ;;  %v338_v29 = vrot.slane %v329_v26, %v306_v3  ;;  %p662_p6 = scmp.ne.s32.totalorder %s981_s11, %s661_s19  ;;  %s665_s13 = sshll.u32 %s767_s16, 4  ;;  %s666_s13 = int_to_ptr.vmem [resolvable:$false] %s665_s13 }
  0x5d   : > { %v348_v31 = vrot.slane %v343_v27, %v302_v2  ;;  %v352_v32 = vrot.slane %v343_v27, %v306_v3  ;;  %s667_s29 = scalar_lea.vmem %s666_s13, 512  ;;  %p668_p13 = scmp.lt.s32.totalorder %s981_s11, %s666_s13 }
  0x5e   : > { %v310_v13 = vadd.f32 %v303_v11, %v296_v8  ;;  %v311_v14 = vadd.f32 %v307_v12, %v297_v10  ;;  %p663_p9 = pnand %p662_p6, %p896_p8  ;;  %p669_p0 = scmp.lt.s32.totalorder %s667_s29, %s661_s19 }
  0x60   : > { %v312_v15 = vadd.f32 %v311_v14, %v310_v13  ;;  %p664_p12 = pneg %p663_p9  ;;  %p670_p5 = por %p669_p0, %p668_p13 }
  0x62   : > { %313 = vadd.xlane.f32.xlu0 %v312_v15  ;;  %p671_p10 = pnand %p670_p5, %p664_p12 }
  0xef   : > { %v314_v16 = vpop.xlane.xlu0 %313 }
  0xf0   : > { %v316_v17 = vmul.f32 0.00390625, %v314_v16 }
  0xf2   : > { %v317_v18 = vsub.f32 %v310_v13, %v316_v17  ;;  %v318_v19 = vsub.f32 %v311_v14, %v316_v17 }
  0xf4   : > { %v319_v20 = vmul.f32 %v317_v18, %v317_v18  ;;  %v320_v21 = vmul.f32 %v318_v19, %v318_v19 }
  0xf6   : > { %v321_v22 = vadd.f32 %v320_v21, %v319_v20 }
  0xf8   : > { %322 = vadd.xlane.f32.xlu0 %v321_v22 }
 0x185   : > { %v323_v23 = vpop.xlane.xlu0 %322 }
 0x186   : > { %v324_v24 = vmul.f32 0.00390625, %v323_v23 }
 0x188   : > { %v325_v25 = vadd.f32 1e-12, %v324_v24 }
 0x18a   : > { %601 = vrsqrt.f32 %v325_v25 }
 0x194   : > { %v602_v30 = vpop.eup %601 }
 0x195   : > { %v327_v33 = vmul.f32 %v602_v30, %v317_v18  ;;  %v328_v34 = vmul.f32 %v602_v30, %v318_v19 }
 0x197   : > { %v341_v35 = vmul.f32 %v334_v28, %v327_v33  ;;  %v342_v36 = vmul.f32 %v338_v29, %v328_v34 }
 0x199   : > { %v355_v37 = vadd.f32 %v348_v31, %v341_v35  ;;  %v356_v38 = vadd.f32 %v352_v32, %v342_v36 }
 0x19b   : > { %357 = vst [vmem:[%s284_s17] sm:$0xff] %v355_v37  ;;  %358 = vst [vmem:[%s284_s17 + $0x8] sm:$0xff] %v356_v38  ;;  %v536_v39 = vpack.c.bf16 %v356_v38, %v355_v37 }
 0x19c   : > { %674 = shalt.err (!%p671_p10)
}
 0x19d   : > { %s675_s17 = scalar_lea.hbm %s979_s27, 256  ;;  %s679_s25 = scalar_lea.hbm %s1058_s5, 512 }
 0x19e   : > { %p676_p1 = scmp.ne.s32.totalorder %s979_s27, %s675_s17  ;;  %p680_p3 = scmp.lt.u32.totalorder %s979_s27, %s1058_s5 }
 0x19f   : > { %p681_p11 = scmp.lt.u32.totalorder %s679_s25, %s675_s17  ;;  %p683_p6 = scmp.lt.u32.totalorder %s675_s17, %s979_s27 }
 0x1a0   : > { %p677_p2 = pnand %p676_p1, %p896_p8 }
 0x1a1   : > { %p682_p4 = por %p681_p11, %p680_p3 }
 0x1a2   : > { %p678_p7 = pneg %p677_p2 }
 0x1a3   : > { %p684_p9 = por %p683_p6, %p682_p4 }
 0x1a5   : > { %p685_p12 = pnand %p684_p9, %p678_p7 }
 0x1a7   : > { %688 = shalt.err (!%p685_p12)
}
 0x1a8   : > { %545 = dma.vmem_to_hbm [thread:$0]  (%p896_p8), %s981_s11, 256, %s979_s27, %s369_s18   ;;  %367 = vst [vmem:[%s973_s14] sm:$0xff] %v536_v39 }
 0x1a9   : > { %s374_s19 = scalar_lea.sflag [#allocation9], %s945_s20  ;;  %s689_s13 = scalar_lea.vmem %s988_s15, 128 }
 0x1aa   : > { %p690_p13 = scmp.ne.s32.totalorder %s988_s15, %s689_s13  ;;  %s768_s29 = smov [#allocation8]  }
 0x1ab   : > { %s693_s17 = sshll.u32 %s768_s29, 4  ;;  %s694_s17 = int_to_ptr.vmem [resolvable:$false] %s693_s17 }
 0x1ac   : > { %p691_p0 = pnand %p690_p13, %p896_p8  ;;  %s695_s26 = scalar_lea.vmem %s694_s17, 256 }
 0x1ad   : > { %p696_p10 = scmp.lt.s32.totalorder %s988_s15, %s694_s17  ;;  %p697_p1 = scmp.lt.s32.totalorder %s695_s26, %s689_s13 }
 0x1ae   : > { %p692_p5 = pneg %p691_p0 }
 0x1af   : > { %p698_p2 = por %p697_p1, %p696_p10 }
 0x1b1   : > { %p699_p7 = pnand %p698_p2, %p692_p5 }
 0x1b3   : > { %702 = shalt.err (!%p699_p7)
}
 0x1b4   : > { %s703_s20 = scalar_lea.hbm %s986_s12, 128  ;;  %s707_s27 = scalar_lea.hbm %s1059_s6, 256 }
 0x1b5   : > { %p704_p3 = scmp.ne.s32.totalorder %s986_s12, %s703_s20  ;;  %p708_p6 = scmp.lt.u32.totalorder %s986_s12, %s1059_s6 }
 0x1b6   : > { %p709_p9 = scmp.lt.u32.totalorder %s707_s27, %s703_s20  ;;  %p711_p13 = scmp.lt.u32.totalorder %s703_s20, %s986_s12 }
 0x1b7   : > { %p705_p11 = pnand %p704_p3, %p896_p8 }
 0x1b8   : > { %p710_p12 = por %p709_p9, %p708_p6 }
 0x1b9   : > { %p706_p4 = pneg %p705_p11 }
 0x1ba   : > { %p712_p0 = por %p711_p13, %p710_p12 }
 0x1bc   : > { %p713_p5 = pnand %p712_p0, %p706_p4 }
 0x1be   : > { %716 = shalt.err (!%p713_p5)
}
 0x1bf   : > { %546 = dma.vmem_to_hbm [thread:$0]  (%p896_p8), %s988_s15, 128, %s986_s12, %s374_s19  }
 0x1c0 PF: > { %s414_s25 = sand.u32 1, %s751_s21   ;;  %p1078_p10 = scmp.ne.s32.totalorder %s1064_s28, 0 }
 0x1c1   : > { %p1079_p1 = scmp.ge.s32.totalorder %s763_s24, 2  ;;  %s415_s30 = scalar_lea.sflag [#allocation4], %s414_s25 }
 0x1c3   : > { %p558_p2 = pnand %p1079_p1, %p1078_p10 }
 0x1c5   : > { %742 = dma.done.wait (!%p558_p2), %s415_s30, 256  }
 0x1c6   : > { %744 = vsyncadd (!%p558_p2), %s415_s30, 4294967040  ;;  %s424_s16 = scalar_lea.sflag [#allocation9], %s414_s25 }
 0x1c7   : > { %746 = dma.done.wait (!%p558_p2), %s424_s16, 128  }
 0x1c8   : > { %748 = vsyncadd (!%p558_p2), %s424_s16, 4294967168  ;;  %p24_p8 = scmp.ge.s32.totalorder %s852_s8, 4   ;;  %s1080_s21 = smov %s755_s22 }
 0x1c9   : > { %s1081_s22 = smov %s759_s23  ;;  %s1082_s23 = smov %s888_s10 }
 0x1ca   : > { %s1083_s24 = smov %s852_s8  ;;  %26 = sbr.rel (!%p24_p8) target bundleno = 8 (0x8), region = 106 }
 0x1d1   :  { %429 = vsyncpa [#allocation3], 1 }
 0x1d2   :  { %431 = vsyncpa [#allocation3 + $0x1], 1 }
 0x1d3   :  { %432 = vsyncpa [#allocation6], 1 }
 0x1d4   :  { %433 = vsyncpa [#allocation4], 1 }
 0x1d5   :  { %435 = vsyncpa [#allocation4 + $0x1], 1 }
 0x1d6   :  { %436 = vsyncpa [#allocation9], 1 }
 0x1d7   :  { %438 = vsyncpa [#allocation9 + $0x1], 1 }

</bundles_post_ra>
